<compile_context>
chip_gen: v7x
topology: tpu7x:2x2x1
jax: 0.10.0
libtpu: 0.0.40
codegen_flags: <defaults>
</compile_context>

<pallas_src>
import jax
import jax.numpy as jnp
from jax.experimental import pallas as pl
from jax.experimental.pallas import tpu as pltpu

_LANE = 128
_NEG_INF = -1e30


def _round_up(x, m):
    return ((x + m - 1) // m) * m


def _cdiv(a, b):
    return (a + b - 1) // b


# --------------------- phase 1: instance-axis scan kernel ---------------------

def _abmil_scan_kernel(x_ref, bias_ref, wbig_ref, vec_ref,
                       acc_out_ref, m_out_ref, l_out_ref,
                       m_ref, l_ref, acc_ref):
    t = pl.program_id(1)
    P = acc_ref.shape[1]               # padded inner dim (multiple of 128)

    @pl.when(t == 0)
    def _init():
        m_ref[...] = jnp.full_like(m_ref, _NEG_INF)
        l_ref[...] = jnp.zeros_like(l_ref)
        acc_ref[...] = jnp.zeros_like(acc_ref)

    # one MXU pass: [h | V-pre | U-pre] = x @ [Wp | Wp@Wv | Wp@Wu] (f32 accum)
    x = x_ref[...]                                                       # (tn, d_in) bf16
    hvu = jnp.dot(x, wbig_ref[...], preferred_element_type=jnp.float32)  # (tn, 3P) f32
    h = hvu[:, 0 * P:1 * P] + vec_ref[:, 0 * P:1 * P]
    v = jnp.tanh(hvu[:, 1 * P:2 * P] + vec_ref[:, 1 * P:2 * P])
    u = jax.nn.sigmoid(hvu[:, 2 * P:3 * P] + vec_ref[:, 2 * P:3 * P])
    # attention score: VPU multiply + lane reduce; b_attn dropped (softmax-invariant)
    s = jnp.sum((v * u) * vec_ref[:, 3 * P:4 * P], axis=-1, keepdims=True)   # (tn, 1)
    s = s + bias_ref[...]              # precomputed additive mask bias (0 or -1e30)

    # online softmax accumulation over the instance axis
    m_prev = m_ref[...]
    m_new = jnp.maximum(m_prev, jnp.max(s, axis=0, keepdims=True))
    alpha = jnp.exp(m_prev - m_new)
    p = jnp.exp(s - m_new)                                               # (tn, 1)
    l_ref[...] = alpha * l_ref[...] + jnp.sum(p, axis=0, keepdims=True)
    acc_ref[...] = alpha * acc_ref[...] + jnp.sum(p * h, axis=0, keepdims=True)
    m_ref[...] = m_new

    # flush this shard's partial state (lane-dense, unmasked stores)
    @pl.when(t == pl.num_programs(1) - 1)
    def _flush():
        acc_out_ref[...] = jnp.broadcast_to(acc_ref[...], acc_out_ref.shape)
        m_out_ref[...] = jnp.broadcast_to(m_ref[...], m_out_ref.shape)
        l_out_ref[...] = jnp.broadcast_to(l_ref[...], l_out_ref.shape)


# --------------- phase 2: merge + genomics MLP + fused heads ------------------

def _abmil_merge_epilogue_kernel(acc_p_ref, m_p_ref, l_p_ref,
                                 g_ref, wg1_ref, bg1_ref, wg2_ref, bg2_ref,
                                 wtop_ref, wbot_ref, bh_ref, out_ref):
    num_shards = acc_p_ref.shape[0] // 8
    P = acc_p_ref.shape[1]

    # merge per-shard online-softmax partial states (runs once; exact math)
    m_glob = m_p_ref[0:1, 0:1]
    for s in range(1, num_shards):
        m_glob = jnp.maximum(m_glob, m_p_ref[8 * s:8 * s + 1, 0:1])
    l_tot = jnp.zeros((1, 1), jnp.float32)
    acc_tot = jnp.zeros((1, P), jnp.float32)
    for s in range(num_shards):
        scale = jnp.exp(m_p_ref[8 * s:8 * s + 1, 0:1] - m_glob)
        l_tot = l_tot + scale * l_p_ref[8 * s:8 * s + 1, 0:1]
        acc_tot = acc_tot + scale * acc_p_ref[8 * s:8 * s + 1, :]
    wsi = acc_tot / l_tot              # exact divide (no approx reciprocal)

    # genomics MLP (padded inner columns are zero throughout)
    gh = jnp.maximum(
        jnp.dot(g_ref[...], wg1_ref[...], preferred_element_type=jnp.float32)
        + bg1_ref[...], 0.0)
    gen = jnp.dot(gh, wg2_ref[...], preferred_element_type=jnp.float32) + bg2_ref[...]

    # heads = concat([wsi, gen]) @ W_heads + b, split top/bottom (no lane concat)
    out = (jnp.dot(wsi, wtop_ref[...], preferred_element_type=jnp.float32)
           + jnp.dot(gen, wbot_ref[...], preferred_element_type=jnp.float32)
           + bh_ref[...])
    out_ref[...] = out.astype(out_ref.dtype)


# ----------------------------------- wrapper ----------------------------------

def abmil_multimodal_forward(data, params, *, tile_n=None, num_shards=2,
                             x_stream_budget_bytes=16 << 20, max_tile_n=2048):
    x = data["patch_features"]
    mask = data["mask"]
    g = data["genomics"]

    n, d_in = x.shape
    inner = params["w_proj"].shape[1]
    out_dim = params["w_out"].shape[1]
    h_out = out_dim + 2                            # [output | braca1 | braca2]
    P = _round_up(inner, _LANE)                    # inner padded to full lanes
    h_pad = _round_up(h_out, _LANE)                # lane-dense head output slab

    f32, bf16 = jnp.float32, jnp.bfloat16

    def padw(w, rows, cols):
        w = w.astype(f32)
        return jnp.pad(w, ((0, rows - w.shape[0]), (0, cols - w.shape[1])))

    # --- trace-time weight fusion / padding (tiny, done once) ---
    wp = padw(params["w_proj"], d_in, P)
    bp = padw(params["b_proj"], 1, P)
    wv = padw(params["w_v"], P, P); bv = padw(params["b_v"], 1, P)
    wu = padw(params["w_u"], P, P); bu = padw(params["b_u"], 1, P)
    # fold inner_proj into the V/U matmuls:  x@(Wp@Wv) + (bp@Wv + bv),  etc.
    w_big = jnp.concatenate([wp, wp @ wv, wp @ wu], axis=1).astype(bf16)   # (d_in, 3P)
    wa = padw(params["w_attn"].reshape(1, inner), 1, P)
    # b_attn is a per-row constant shift -> softmax-invariant -> dropped.
    vec_consts = jnp.concatenate([bp, bp @ wv + bv, bp @ wu + bu, wa], axis=1)  # (1, 4P)

    wg1 = padw(params["w_g1"], params["w_g1"].shape[0], P).astype(bf16)
    bg1 = padw(params["b_g1"], 1, P)
    wg2 = padw(params["w_g2"], P, P)
    bg2 = padw(params["b_g2"], 1, P)
    w_heads = jnp.concatenate([params["w_out"], params["w_b1"], params["w_b2"]], axis=1)
    b_heads = jnp.concatenate([params["b_out"], params["b_b1"], params["b_b2"]], axis=1)
    w_top = padw(w_heads[:inner], P, h_pad)        # multiplies wsi embedding
    w_bot = padw(w_heads[inner:], P, h_pad)        # multiplies genomics embedding
    b_head = padw(b_heads, 1, h_pad)
    g_bf = g.astype(bf16)

    # --- tile size derived from a VMEM budget for the streamed operands ---
    num_shards = max(1, int(num_shards))
    if tile_n is None:
        # double-buffered x (bf16) + lane-padded mask-bias (f32) per row
        row_bytes = 2 * (d_in * 2 + _LANE * 4)
        tn = x_stream_budget_bytes // row_bytes
        tn = min(max_tile_n, max(16, (tn // 16) * 16))   # bf16 sublane: mult of 16
    else:
        tn = max(16, _round_up(int(tile_n), 16))
    tn = min(tn, _round_up(_cdiv(n, num_shards), 16))

    num_tiles = _cdiv(n, tn)
    num_shards = min(num_shards, num_tiles)
    num_tiles = _round_up(num_tiles, num_shards)
    T = num_tiles // num_shards
    n_pad = num_tiles * tn

    # --- instance-axis inputs: bf16 features + precomputed additive mask bias ---
    # TODO(synk): ideally patch_features arrive already in bf16 from the producer.
    x_bf = x.astype(bf16)
    mask_bias = jnp.where(mask.reshape(-1, 1).astype(f32) > 0.5,
                          jnp.float32(_NEG_INF), jnp.float32(0.0))
    if n_pad != n:
        x_bf = jnp.pad(x_bf, ((0, n_pad - n), (0, 0)))
        mask_bias = jnp.pad(mask_bias, ((0, n_pad - n), (0, 0)),
                            constant_values=_NEG_INF)

    # --- VMEM budget arithmetic -> request just what is needed (v7x-safe cap) ---
    vmem_need = (2 * tn * d_in * 2                       # x tiles (bf16, double buffered)
                 + 2 * tn * _LANE * 4                    # mask-bias tiles (lane padded)
                 + 2 * (w_big.size * 2 + vec_consts.size * 4)
                 + 2 * 3 * 8 * max(P, _LANE) * 4         # partial-state outputs
                 + (2 + P) * 4)                          # scratch
    vmem_limit = int(min(max(2 * vmem_need, 8 << 20), 56 << 20))

    acc_p, m_p, l_p = pl.pallas_call(
        _abmil_scan_kernel,
        out_shape=(jax.ShapeDtypeStruct((num_shards * 8, P), f32),
                   jax.ShapeDtypeStruct((num_shards * 8, _LANE), f32),
                   jax.ShapeDtypeStruct((num_shards * 8, _LANE), f32)),
        grid_spec=pltpu.PrefetchScalarGridSpec(
            num_scalar_prefetch=0,
            grid=(num_shards, T),
            in_specs=[
                pl.BlockSpec((tn, d_in), lambda s, t: (s * T + t, 0)),   # x stream
                pl.BlockSpec((tn, 1), lambda s, t: (s * T + t, 0)),      # mask bias
                pl.BlockSpec((d_in, 3 * P), lambda s, t: (0, 0)),        # fused weights
                pl.BlockSpec((1, 4 * P), lambda s, t: (0, 0)),           # fused biases + wa
            ],
            out_specs=[
                pl.BlockSpec((8, P), lambda s, t: (s, 0)),
                pl.BlockSpec((8, _LANE), lambda s, t: (s, 0)),
                pl.BlockSpec((8, _LANE), lambda s, t: (s, 0)),
            ],
            scratch_shapes=[pltpu.VMEM((1, 1), f32),      # running max m
                            pltpu.VMEM((1, 1), f32),      # running denom l
                            pltpu.VMEM((1, P), f32)],     # running weighted sum
        ),
        compiler_params=pltpu.CompilerParams(
            dimension_semantics=("parallel", "arbitrary"),   # shards x reduction
            vmem_limit_bytes=vmem_limit,
        ),
    )(x_bf, mask_bias, w_big, vec_consts)

    heads = pl.pallas_call(
        _abmil_merge_epilogue_kernel,
        out_shape=jax.ShapeDtypeStruct((1, h_pad), f32),
    )(acc_p, m_p, l_p, g_bf, wg1, bg1, wg2, bg2, w_top, w_bot, b_head)

    output = heads[:, :out_dim]
    braca1 = heads[:, out_dim:out_dim + 1]
    braca2 = heads[:, out_dim + 1:out_dim + 2]
    return output, braca1, braca2


# ---------------------------- pure-JAX reference -------------------------------

def abmil_reference(data, params):
    x, mask, g = data["patch_features"], data["mask"], data["genomics"]
    p = params
    keep = mask[:, 0] < 0.5
    xs = x[keep]                                      # mimics x[~mask.bool()]
    h = xs @ p["w_proj"] + p["b_proj"]
    v = jnp.tanh(h @ p["w_v"] + p["b_v"])
    u = jax.nn.sigmoid(h @ p["w_u"] + p["b_u"])
    s = (v * u) @ p["w_attn"] + p["b_attn"]
    a = jax.nn.softmax(s, axis=0)
    wsi = jnp.sum(a * h, axis=0, keepdims=True)
    gen = jnp.maximum(g @ p["w_g1"] + p["b_g1"], 0.0) @ p["w_g2"] + p["b_g2"]
    xc = jnp.concatenate([wsi, gen], axis=1)
    return (xc @ p["w_out"] + p["b_out"],
            xc @ p["w_b1"] + p["b_b1"],
            xc @ p["w_b2"] + p["b_b2"])


# ----------------------------------- main --------------------------------------

if __name__ == "__main__":
    # Small shapes consistent with the module's forward pass.
    N, D_IN, G_IN, INNER, OUT = 100, 128, 256, 64, 4

    key = jax.random.PRNGKey(0)
    ks = jax.random.split(key, 20)

    def lin(kw, kb, fan_in, fan_out):
        bound = 1.0 / jnp.sqrt(fan_in)
        w = jax.random.uniform(kw, (fan_in, fan_out), jnp.float32, -bound, bound)
        b = jax.random.uniform(kb, (1, fan_out), jnp.float32, -bound, bound)
        return w, b

    params = {}
    params["w_proj"], params["b_proj"] = lin(ks[0], ks[1], D_IN, INNER)
    params["w_v"], params["b_v"] = lin(ks[2], ks[3], INNER, INNER)
    params["w_u"], params["b_u"] = lin(ks[4], ks[5], INNER, INNER)
    params["w_attn"], params["b_attn"] = lin(ks[6], ks[7], INNER, 1)
    params["w_g1"], params["b_g1"] = lin(ks[8], ks[9], G_IN, INNER)
    params["w_g2"], params["b_g2"] = lin(ks[10], ks[11], INNER, INNER)
    params["w_out"], params["b_out"] = lin(ks[12], ks[13], 2 * INNER, OUT)
    params["w_b1"], params["b_b1"] = lin(ks[14], ks[15], 2 * INNER, 1)
    params["w_b2"], params["b_b2"] = lin(ks[16], ks[17], 2 * INNER, 1)

    kx, kg = jax.random.split(ks[18])
    patch_features = jax.random.normal(kx, (N, D_IN), jnp.float32)
    genomics = jax.random.normal(kg, (1, G_IN), jnp.float32)
    # mask out the last quarter of the instances (1.0 = masked / padding)
    mask = (jnp.arange(N) >= (3 * N) // 4).astype(jnp.float32)[:, None]

    data = {"patch_features": patch_features, "mask": mask, "genomics": genomics}

    ref_out, ref_b1, ref_b2 = abmil_reference(data, params)

    # Tolerances loosened deliberately: the x stream and fused matmul weights are
    # bf16 (per perf review); accumulation is f32.
    ATOL = RTOL = 2e-2
    configs = [
        {},                     # budget-derived tile, 2 shards (v7x dual-TC path)
        {"tile_n": 16},         # many tiles per shard -> exercises online softmax
        {"num_shards": 1},      # single-shard scan path
    ]
    for cfg in configs:
        out, b1, b2 = jax.block_until_ready(
            abmil_multimodal_forward(data, params, **cfg))
        assert out.shape == (1, OUT) and b1.shape == (1, 1) and b2.shape == (1, 1)
        assert jnp.allclose(out, ref_out, atol=ATOL, rtol=RTOL), (cfg, out, ref_out)
        assert jnp.allclose(b1, ref_b1, atol=ATOL, rtol=RTOL), (cfg, b1, ref_b1)
        assert jnp.allclose(b2, ref_b2, atol=ATOL, rtol=RTOL), (cfg, b2, ref_b2)

    print("KERNEL_OK")
</pallas_src>

<mosaic_0001>
module attributes {stable_mosaic.version = 11 : i64} {
  func.func @_abmil_scan_kernel(%arg0: i32, %arg1: i32, %arg2: memref<64x128xbf16, #tpu.memory_space<vmem>>, %arg3: memref<64x1xf32, #tpu.memory_space<vmem>>, %arg4: memref<128x384xbf16, #tpu.memory_space<vmem>>, %arg5: memref<1x512xf32, #tpu.memory_space<vmem>>, %arg6: memref<8x128xf32, #tpu.memory_space<vmem>>, %arg7: memref<8x128xf32, #tpu.memory_space<vmem>>, %arg8: memref<8x128xf32, #tpu.memory_space<vmem>>, %arg9: memref<1x1xf32, #tpu.memory_space<vmem>>, %arg10: memref<1x1xf32, #tpu.memory_space<vmem>>, %arg11: memref<1x128xf32, #tpu.memory_space<vmem>>) attributes {dimension_semantics = [#tpu.dimension_semantics<parallel>, #tpu.dimension_semantics<arbitrary>], iteration_bounds = array<i64: 2, 1>, scalar_prefetch = 0 : i64, scratch_operands = 3 : i64, tpu.core_type = #tpu.core_type<tc>, window_params = [{transform_indices = @transform_0, window_bounds = array<i64: 64, 128>}, {transform_indices = @transform_1, window_bounds = array<i64: 64, 1>}, {pipeline_mode = #tpu.pipeline_mode<synchronous>, transform_indices = @transform_2, window_bounds = array<i64: 128, 384>}, {pipeline_mode = #tpu.pipeline_mode<synchronous>, transform_indices = @transform_3, window_bounds = array<i64: 1, 512>}, {transform_indices = @transform_4, window_bounds = array<i64: 8, 128>}, {transform_indices = @transform_5, window_bounds = array<i64: 8, 128>}, {transform_indices = @transform_6, window_bounds = array<i64: 8, 128>}]} {
    %c0_i32 = arith.constant 0 : i32
    %0 = arith.cmpi eq, %arg1, %c0_i32 : i32
    %1 = arith.extui %0 : i1 to i32
    %c0_i32_0 = arith.constant 0 : i32
    %2 = arith.cmpi ne, %1, %c0_i32_0 : i32
    scf.if %2 {
      %cst_30 = arith.constant -1.000000e+30 : f32
      %60 = vector.broadcast %cst_30 : f32 to vector<1x1xf32>
      %c0_31 = arith.constant 0 : index
      %c0_32 = arith.constant 0 : index
      %61 = vector.load %arg9[%c0_31, %c0_32] : memref<1x1xf32, #tpu.memory_space<vmem>>, vector<1x1xf32>
      tpu.vector_store %arg9[%c0_31, %c0_32], %60 {strides = array<i32>} : memref<1x1xf32, #tpu.memory_space<vmem>>, vector<1x1xf32>,
      %cst_33 = arith.constant 0.000000e+00 : f32
      %62 = vector.broadcast %cst_33 : f32 to vector<1x1xf32>
      %c0_34 = arith.constant 0 : index
      %c0_35 = arith.constant 0 : index
      %63 = vector.load %arg10[%c0_34, %c0_35] : memref<1x1xf32, #tpu.memory_space<vmem>>, vector<1x1xf32>
      tpu.vector_store %arg10[%c0_34, %c0_35], %62 {strides = array<i32>} : memref<1x1xf32, #tpu.memory_space<vmem>>, vector<1x1xf32>,
      %cst_36 = arith.constant 0.000000e+00 : f32
      %64 = vector.broadcast %cst_36 : f32 to vector<1x128xf32>
      %c0_37 = arith.constant 0 : index
      %c0_38 = arith.constant 0 : index
      %65 = vector.load %arg11[%c0_37, %c0_38] : memref<1x128xf32, #tpu.memory_space<vmem>>, vector<1x128xf32>
      tpu.vector_store %arg11[%c0_37, %c0_38], %64 {strides = array<i32>} : memref<1x128xf32, #tpu.memory_space<vmem>>, vector<1x128xf32>,
    } else {
    }
    %c0 = arith.constant 0 : index
    %c0_1 = arith.constant 0 : index
    %3 = vector.load %arg2[%c0, %c0_1] : memref<64x128xbf16, #tpu.memory_space<vmem>>, vector<64x128xbf16>
    %c0_2 = arith.constant 0 : index
    %c0_3 = arith.constant 0 : index
    %4 = vector.load %arg4[%c0_2, %c0_3] : memref<128x384xbf16, #tpu.memory_space<vmem>>, vector<128x384xbf16>
    %cst = arith.constant dense<0.000000e+00> : vector<64x384xf32>
    %5 = tpu.matmul %3, %4, %cst {dimension_numbers = #tpu.dot_dimension_numbers<[1], [0], [0], [1], [0, 0, 1, 1], [], []>} : vector<64x128xbf16>, vector<128x384xbf16>, vector<64x384xf32> -> vector<64x384xf32>
    %6 = vector.extract_strided_slice %5 {offsets = [0, 0], sizes = [64, 128], strides = [1, 1]} : vector<64x384xf32> to vector<64x128xf32>
    %c0_4 = arith.constant 0 : index
    %c0_5 = arith.constant 0 : index
    %7 = vector.load %arg5[%c0_4, %c0_5] : memref<1x512xf32, #tpu.memory_space<vmem>>, vector<1x128xf32>
    %8 = vector.broadcast %7 : vector<1x128xf32> to vector<64x128xf32>
    %9 = arith.addf %6, %8 : vector<64x128xf32>
    %10 = vector.extract_strided_slice %5 {offsets = [0, 128], sizes = [64, 128], strides = [1, 1]} : vector<64x384xf32> to vector<64x128xf32>
    %c0_6 = arith.constant 0 : index
    %c128 = arith.constant 128 : index
    %11 = vector.load %arg5[%c0_6, %c128] : memref<1x512xf32, #tpu.memory_space<vmem>>, vector<1x128xf32>
    %12 = vector.broadcast %11 : vector<1x128xf32> to vector<64x128xf32>
    %13 = arith.addf %10, %12 : vector<64x128xf32>
    %14 = math.tanh %13 : vector<64x128xf32>
    %15 = vector.extract_strided_slice %5 {offsets = [0, 256], sizes = [64, 128], strides = [1, 1]} : vector<64x384xf32> to vector<64x128xf32>
    %c0_7 = arith.constant 0 : index
    %c256 = arith.constant 256 : index
    %16 = vector.load %arg5[%c0_7, %c256] : memref<1x512xf32, #tpu.memory_space<vmem>>, vector<1x128xf32>
    %17 = vector.broadcast %16 : vector<1x128xf32> to vector<64x128xf32>
    %18 = arith.addf %15, %17 : vector<64x128xf32>
    %19 = arith.negf %18 : vector<64x128xf32>
    %20 = math.exp %19 : vector<64x128xf32>
    %cst_8 = arith.constant 1.000000e+00 : f32
    %21 = vector.broadcast %cst_8 : f32 to vector<64x128xf32>
    %22 = arith.addf %21, %20 : vector<64x128xf32>
    %23 = arith.divf %21, %22 : vector<64x128xf32>
    %24 = arith.mulf %14, %23 : vector<64x128xf32>
    %c0_9 = arith.constant 0 : index
    %c384 = arith.constant 384 : index
    %25 = vector.load %arg5[%c0_9, %c384] : memref<1x512xf32, #tpu.memory_space<vmem>>, vector<1x128xf32>
    %26 = vector.broadcast %25 : vector<1x128xf32> to vector<64x128xf32>
    %27 = arith.mulf %24, %26 : vector<64x128xf32>
    %cst_10 = arith.constant dense<0.000000e+00> : vector<64xf32>
    %28 = vector.multi_reduction <add>, %27, %cst_10 [1] : vector<64x128xf32> to vector<64xf32>
    %29 = vector.shape_cast %28 : vector<64xf32> to vector<64x1xf32>
    %c0_11 = arith.constant 0 : index
    %c0_12 = arith.constant 0 : index
    %30 = vector.load %arg3[%c0_11, %c0_12] : memref<64x1xf32, #tpu.memory_space<vmem>>, vector<64x1xf32>
    %31 = arith.addf %29, %30 : vector<64x1xf32>
    %c0_13 = arith.constant 0 : index
    %c0_14 = arith.constant 0 : index
    %32 = vector.load %arg9[%c0_13, %c0_14] : memref<1x1xf32, #tpu.memory_space<vmem>>, vector<1x1xf32>
    %cst_15 = arith.constant dense<0xFF800000> : vector<1xf32>
    %33 = vector.multi_reduction <maximumf>, %31, %cst_15 [0] : vector<64x1xf32> to vector<1xf32>
    %34 = vector.shape_cast %33 : vector<1xf32> to vector<1x1xf32>
    %35 = arith.maximumf %32, %34 : vector<1x1xf32>
    %36 = arith.subf %32, %35 : vector<1x1xf32>
    %37 = math.exp %36 : vector<1x1xf32>
    %38 = vector.broadcast %35 : vector<1x1xf32> to vector<64x1xf32>
    %39 = arith.subf %31, %38 : vector<64x1xf32>
    %40 = math.exp %39 : vector<64x1xf32>
    %c0_16 = arith.constant 0 : index
    %c0_17 = arith.constant 0 : index
    %41 = vector.load %arg10[%c0_16, %c0_17] : memref<1x1xf32, #tpu.memory_space<vmem>>, vector<1x1xf32>
    %42 = arith.mulf %37, %41 : vector<1x1xf32>
    %cst_18 = arith.constant dense<0.000000e+00> : vector<1xf32>
    %43 = vector.multi_reduction <add>, %40, %cst_18 [0] : vector<64x1xf32> to vector<1xf32>
    %44 = vector.shape_cast %43 : vector<1xf32> to vector<1x1xf32>
    %45 = arith.addf %42, %44 : vector<1x1xf32>
    %c0_19 = arith.constant 0 : index
    %c0_20 = arith.constant 0 : index
    %46 = vector.load %arg10[%c0_19, %c0_20] : memref<1x1xf32, #tpu.memory_space<vmem>>, vector<1x1xf32>
    tpu.vector_store %arg10[%c0_19, %c0_20], %45 {strides = array<i32>} : memref<1x1xf32, #tpu.memory_space<vmem>>, vector<1x1xf32>,
    %c0_21 = arith.constant 0 : index
    %c0_22 = arith.constant 0 : index
    %47 = vector.load %arg11[%c0_21, %c0_22] : memref<1x128xf32, #tpu.memory_space<vmem>>, vector<1x128xf32>
    %48 = vector.broadcast %37 : vector<1x1xf32> to vector<1x128xf32>
    %49 = arith.mulf %48, %47 : vector<1x128xf32>
    %50 = vector.broadcast %40 : vector<64x1xf32> to vector<64x128xf32>
    %51 = arith.mulf %50, %9 : vector<64x128xf32>
    %cst_23 = arith.constant dense<0.000000e+00> : vector<128xf32>
    %52 = vector.multi_reduction <add>, %51, %cst_23 [0] : vector<64x128xf32> to vector<128xf32>
    %53 = vector.shape_cast %52 : vector<128xf32> to vector<1x128xf32>
    %54 = arith.addf %49, %53 : vector<1x128xf32>
    %c0_24 = arith.constant 0 : index
    %c0_25 = arith.constant 0 : index
    %55 = vector.load %arg11[%c0_24, %c0_25] : memref<1x128xf32, #tpu.memory_space<vmem>>, vector<1x128xf32>
    tpu.vector_store %arg11[%c0_24, %c0_25], %54 {strides = array<i32>} : memref<1x128xf32, #tpu.memory_space<vmem>>, vector<1x128xf32>,
    %c0_26 = arith.constant 0 : index
    %c0_27 = arith.constant 0 : index
    %56 = vector.load %arg9[%c0_26, %c0_27] : memref<1x1xf32, #tpu.memory_space<vmem>>, vector<1x1xf32>
    tpu.vector_store %arg9[%c0_26, %c0_27], %35 {strides = array<i32>} : memref<1x1xf32, #tpu.memory_space<vmem>>, vector<1x1xf32>,
    %c0_i32_28 = arith.constant 0 : i32
    %57 = arith.cmpi eq, %arg1, %c0_i32_28 : i32
    %58 = arith.extui %57 : i1 to i32
    %c0_i32_29 = arith.constant 0 : i32
    %59 = arith.cmpi ne, %58, %c0_i32_29 : i32
    scf.if %59 {
      %c0_30 = arith.constant 0 : index
      %c0_31 = arith.constant 0 : index
      %60 = vector.load %arg11[%c0_30, %c0_31] : memref<1x128xf32, #tpu.memory_space<vmem>>, vector<1x128xf32>
      %61 = vector.shape_cast %60 : vector<1x128xf32> to vector<1x128xf32>
      %62 = vector.broadcast %61 : vector<1x128xf32> to vector<8x128xf32>
      %c0_32 = arith.constant 0 : index
      %c0_33 = arith.constant 0 : index
      %63 = vector.load %arg6[%c0_32, %c0_33] : memref<8x128xf32, #tpu.memory_space<vmem>>, vector<8x128xf32>
      tpu.vector_store %arg6[%c0_32, %c0_33], %62 {strides = array<i32>} : memref<8x128xf32, #tpu.memory_space<vmem>>, vector<8x128xf32>,
      %c0_34 = arith.constant 0 : index
      %c0_35 = arith.constant 0 : index
      %64 = vector.load %arg9[%c0_34, %c0_35] : memref<1x1xf32, #tpu.memory_space<vmem>>, vector<1x1xf32>
      %65 = vector.shape_cast %64 : vector<1x1xf32> to vector<1x1xf32>
      %66 = vector.broadcast %65 : vector<1x1xf32> to vector<8x128xf32>
      %c0_36 = arith.constant 0 : index
      %c0_37 = arith.constant 0 : index
      %67 = vector.load %arg7[%c0_36, %c0_37] : memref<8x128xf32, #tpu.memory_space<vmem>>, vector<8x128xf32>
      tpu.vector_store %arg7[%c0_36, %c0_37], %66 {strides = array<i32>} : memref<8x128xf32, #tpu.memory_space<vmem>>, vector<8x128xf32>,
      %c0_38 = arith.constant 0 : index
      %c0_39 = arith.constant 0 : index
      %68 = vector.load %arg10[%c0_38, %c0_39] : memref<1x1xf32, #tpu.memory_space<vmem>>, vector<1x1xf32>
      %69 = vector.shape_cast %68 : vector<1x1xf32> to vector<1x1xf32>
      %70 = vector.broadcast %69 : vector<1x1xf32> to vector<8x128xf32>
      %c0_40 = arith.constant 0 : index
      %c0_41 = arith.constant 0 : index
      %71 = vector.load %arg8[%c0_40, %c0_41] : memref<8x128xf32, #tpu.memory_space<vmem>>, vector<8x128xf32>
      tpu.vector_store %arg8[%c0_40, %c0_41], %70 {strides = array<i32>} : memref<8x128xf32, #tpu.memory_space<vmem>>, vector<8x128xf32>,
    } else {
    }
    return
  }
  func.func @transform_0(%arg0: i32, %arg1: i32) -> (i32, i32) {
    %c1_i32 = arith.constant 1 : i32
    %0 = arith.muli %arg0, %c1_i32 : i32
    %1 = arith.addi %0, %arg1 : i32
    %c0_i32 = arith.constant 0 : i32
    %c0_i32_0 = arith.constant 0 : i32
    return %1, %c0_i32 : i32, i32
  }
  func.func @transform_1(%arg0: i32, %arg1: i32) -> (i32, i32) {
    %c1_i32 = arith.constant 1 : i32
    %0 = arith.muli %arg0, %c1_i32 : i32
    %1 = arith.addi %0, %arg1 : i32
    %c0_i32 = arith.constant 0 : i32
    %c0_i32_0 = arith.constant 0 : i32
    return %1, %c0_i32 : i32, i32
  }
  func.func @transform_2(%arg0: i32, %arg1: i32) -> (i32, i32) {
    %c0_i32 = arith.constant 0 : i32
    %c0_i32_0 = arith.constant 0 : i32
    %c0_i32_1 = arith.constant 0 : i32
    return %c0_i32, %c0_i32_0 : i32, i32
  }
  func.func @transform_3(%arg0: i32, %arg1: i32) -> (i32, i32) {
    %c0_i32 = arith.constant 0 : i32
    %c0_i32_0 = arith.constant 0 : i32
    %c0_i32_1 = arith.constant 0 : i32
    return %c0_i32, %c0_i32_0 : i32, i32
  }
  func.func @transform_4(%arg0: i32, %arg1: i32) -> (i32, i32) {
    %c0_i32 = arith.constant 0 : i32
    %c0_i32_0 = arith.constant 0 : i32
    return %arg0, %c0_i32 : i32, i32
  }
  func.func @transform_5(%arg0: i32, %arg1: i32) -> (i32, i32) {
    %c0_i32 = arith.constant 0 : i32
    %c0_i32_0 = arith.constant 0 : i32
    return %arg0, %c0_i32 : i32, i32
  }
  func.func @transform_6(%arg0: i32, %arg1: i32) -> (i32, i32) {
    %c0_i32 = arith.constant 0 : i32
    %c0_i32_0 = arith.constant 0 : i32
    return %arg0, %c0_i32 : i32, i32
  }
}

</mosaic_0001>

<bundles_post_ra>
// kernel: tpu_custom_call.1
= control target key start
LH: loop header
LB: loop body
LE: loop exit
PB: predicated region body
PF: predicated region fallthrough
CT: control target
= control target key end

     0   :  { %12 = vsyncpa [#allocation6], 0  ;;  %s2043_s0 = inlined_call_operand.vmem [shape: bf16[128,128], index: 0, kind: input, shape index: {}]   ;;  %s2044_s1 = inlined_call_operand.vmem [shape: f32[128,1], index: 1, kind: input, shape index: {}]   ;;  %s2045_s2 = inlined_call_operand.hbm [shape: bf16[128,384], index: 2, kind: input, shape index: {}]   ;;  %s2046_s3 = inlined_call_operand.vmem [shape: f32[1,512], index: 3, kind: input, shape index: {}]   ;;  %s2047_s4 = inlined_call_operand.hbm [shape: f32[16,128], index: 4, kind: output, shape index: {0}]   ;;  %s2048_s5 = inlined_call_operand.hbm [shape: f32[16,128], index: 5, kind: output, shape index: {1}]   ;;  %s2049_s6 = inlined_call_operand.hbm [shape: f32[16,128], index: 6, kind: output, shape index: {2}]  }
   0x1   :  { %13 = vsyncpa [#allocation7], 0 }
   0x2   :  { %15 = vsyncpa [#allocation7 + $0x1], 0 }
   0x3   :  { %16 = vsyncpa [#allocation10], 0 }
   0x4   :  { %18 = vsyncpa [#allocation10 + $0x1], 0  ;;  %s1723_s21 = smov 0   ;;  %s1725_s22 = smov 0  }
   0x5   :  { %s1727_s23 = smov 0   ;;  %s1729_s24 = smov 0  }
   0x6   :  { %s1731_s25 = smov 0   ;;  %s1733_s26 = smov 0  }
   0x7 LB: > { %s1754_s27 = sadd.s32 4294967295, %s1677_s26   ;;  %s1222_s28 = sadd.s32 4294967294, %s1677_s26   ;;  %s1677_s26 = sphi %s1733_s26, %s24_s26   ;;  %s1673_s25 = sphi %s1731_s25, %s2066_s25   ;;  %s1669_s24 = sphi %s1729_s24, %s2065_s24   ;;  %s1665_s23 = sphi %s1727_s23, %s2064_s23   ;;  %s1661_s22 = sphi %s1725_s22, %s2063_s22   ;;  %s1657_s21 = sphi %s1723_s21, %s2062_s21  }
   0x8   : > { %s36_s29 = sadd.s32 1, %s1673_s25  ;;  %s141_s30 = sadd.s32 1, %s1665_s23 }
   0x9   : > { %p38_p0 = scmp.ge.s32.totalorder %s36_s29, 2  ;;  %p151_p1 = scmp.ne.s32.totalorder %s1665_s23, %s1661_s22 }
   0xa   : > { %p152_p2 = scmp.eq.s32.totalorder %s1754_s27, 1  ;;  %p157_p3 = scmp.ne.s32.totalorder %s1661_s22, %s1657_s21 }
   0xb   : > { %s2068_s29 = smov (%p38_p0, %s36_s29), 0  ;;  %p158_p5 = scmp.eq.s32.totalorder %s1222_s28, 1 }
   0xc   : > { %p1766_p4 = por %p152_p2, %p151_p1  ;;  %s138_s8 = ssub.s32 %s1673_s25, %s2068_s29 }
   0xd   : > { %p1223_p6 = scmp.ge.s32.totalorder %s1677_s26, 1  ;;  %p139_p7 = scmp.eq.s32.totalorder %s138_s8, 0 }
   0xe   : > { %s2053_s7 = scalar_select %p1766_p4, 1, 0 }
   0xf   : > { %p1775_p8 = por %p158_p5, %p157_p3  ;;  %p217_p9 = scmp.lt.s32.totalorder %s1677_s26, 3 }
  0x10   : > { %s1781_s10 = scalar_select %p139_p7, %s1665_s23, %s141_s30  }
  0x11   : > { %s2054_s9 = scalar_select %p1775_p8, 1, 0 }
  0x12   : > { %p1783_p10 = pnand %p1223_p6, %p217_p9  ;;  %p2050_p11 = scmp.eq.s32.totalorder %s1754_s27, 0 }
  0x13   : > { %s1679_s12 = smov [#allocation5]   ;;  %s1507_s17 = scalar_lea.hbm %s2045_s2, 3072 }
  0x14   : > { %s2055_s11 = scalar_select %p1783_p10, 1, 0 }
  0x15   : > { %p1332_p12 = pneg %p1783_p10  ;;  %s229_s13 = sshll.u32 %s1679_s12, 4  ;;  %s230_s13 = int_to_ptr.vmem [resolvable:$true] %s229_s13 }
  0x16   : > { %p1508_p0 = scmp.ne.s32.totalorder %s2045_s2, %s1507_s17  ;;  %p1514_p5 = scmp.lt.u32.totalorder %s1507_s17, %s2045_s2 }
  0x17   : > { %p1792_p13 = pnand %p2050_p11, %p1332_p12 }
  0x19   : > { %p1509_p1 = pneg %p1792_p13 }
  0x1b   : > { %p1510_p2 = pnand %p1509_p1, %p1508_p0 }
  0x1d   : > { %p1511_p3 = pneg %p1510_p2 }
  0x1f   : > { %p1516_p6 = pnand %p1514_p5, %p1511_p3 }
  0x21   : > { %1519 = shalt.err (!%p1516_p6)
}
  0x22   : > { %s1520_s8 = scalar_lea.vmem %s230_s13, 3072  ;;  %p1528_p11 = scmp.lt.s32.totalorder %s230_s13, %s230_s13 }
  0x23   : > { %p1521_p7 = scmp.ne.s32.totalorder %s230_s13, %s1520_s8  ;;  %p1529_p8 = scmp.lt.s32.totalorder %s1520_s8, %s1520_s8 }
  0x25   : > { %p1523_p9 = pnand %p1521_p7, %p1509_p1  ;;  %p1530_p4 = por %p1529_p8, %p1528_p11 }
  0x27   : > { %p1524_p12 = pneg %p1523_p9 }
  0x29   : > { %p1531_p10 = pnand %p1530_p4, %p1524_p12 }
  0x2b   : > { %1534 = shalt.err (!%p1531_p10)
}
  0x2c   : > { %s1680_s12 = smov 192   ;;  %s1681_s15 = smov 12  }
  0x2d   : > { %1335 = dma.hbm_to_vmem [thread:$0]  (!%p1792_p13), %s2045_s2, 3072, %s230_s13, [#allocation6], %s1680_s12, %s1680_s12, %s1681_s15  }
  0x2e   : > { %p2057_p0 = scmp.ne.s32.totalorder %s2055_s11, 0 }
  0x2f   : > { %p2058_p2 = scmp.eq.s32.totalorder (!%p2057_p0), %s1754_s27, 0 }
  0x30   : > { %270 = sbr.rel (%p2057_p0) target bundleno = 748 (0x2ec), region = 36 }
  0x37   : > { %1644 = dma.done.wait (%p2058_p2), [#allocation6], 3072   ;;  %p2059_p1 = pmov %p2058_p2 }
  0x38   : > { %v1682_v0 = vmov 0   ;;  %s1231_s14 = sshll.u32 %s1669_s24, 3  ;;  %v1405_v1 = vld [vmem:[#allocation5 + $0x4] ss:$12 sps:$4 sm:$0xff]   ;;  %v1407_v2 = vld [vmem:[#allocation5 + $0x8] ss:$12 sps:$4 sm:$0xff]  }
  0x39   : > { %1646 = vsyncadd (%p2059_p1), [#allocation6], 4294964224  ;;  %566 = vmatprep.mubr.bf16.mxu0 %v1682_v0  ;;  %1404 = vset.pattern.permute.xlu1 %v1682_v0  ;;  %v1408_v3 = vld [vmem:[#allocation5] ss:$12 sps:$4 sm:$0xff]   ;;  %p319_p4 = scmp.lt.s32.totalorder %s1231_s14, 15  ;;  %vm338_vm0 = vcmask 0  }
  0x3a   : > { %1403 = vset.pattern.permute.xlu0 %v1682_v0  ;;  %534 = vmatprep.subr.bf16.mxu0 %v1405_v1  ;;  %v1409_v4 = vld [vmem:[#allocation5 + $0x1c] ss:$12 sps:$4 sm:$0xff]   ;;  %v1411_v5 = vld [vmem:[#allocation5 + $0x20] ss:$12 sps:$4 sm:$0xff]   ;;  %v1412_v6 = vld [vmem:[#allocation5 + $0x18] ss:$12 sps:$4 sm:$0xff]  }
  0x3b   : > { %1298 = vmatprep.subr.bf16.mxu1 %v1407_v2  ;;  %535 = vmatpush1.bf16.msra.mxu0 %v1408_v3  ;;  %v1413_v7 = vld [vmem:[#allocation5 + $0x34] ss:$12 sps:$4 sm:$0xff]   ;;  %v1415_v8 = vld [vmem:[#allocation5 + $0x38] ss:$12 sps:$4 sm:$0xff]   ;;  %v1416_v9 = vld [vmem:[#allocation5 + $0x30] ss:$12 sps:$4 sm:$0xff]  }
  0x3c   : > { %1299 = vmatpush3.bf16.msra.mxu1 %v1407_v2  ;;  %536 = vmatprep.subr.bf16.mxu0 %v1409_v4  ;;  %s2070_s14 = smov (!%p319_p4, %s1231_s14), 15  ;;  %v1417_v10 = vld [vmem:[#allocation5 + $0x4c] ss:$12 sps:$4 sm:$0xff]   ;;  %v1419_v11 = vld [vmem:[#allocation5 + $0x50] ss:$12 sps:$4 sm:$0xff]   ;;  %vm829_vm1 = vcmask 7168  }
  0x3d   : > { %1300 = vmatprep.subr.bf16.mxu1 %v1411_v5  ;;  %v1420_v12 = vld [vmem:[#allocation5 + $0x48] ss:$12 sps:$4 sm:$0xff]   ;;  %s1232_s11 = sshll.u32 %s2070_s14, 2  ;;  %v1421_v13 = vld [vmem:[#allocation5 + $0x64] ss:$12 sps:$4 sm:$0xff]   ;;  %s1234_s18 = sshll.u32 %s2070_s14, 3 }
  0x3e   : > { %v1423_v14 = vld [vmem:[#allocation5 + $0x68] ss:$12 sps:$4 sm:$0xff]   ;;  %v1424_v15 = vld [vmem:[#allocation5 + $0x60] ss:$12 sps:$4 sm:$0xff]   ;;  %s1828_s19 = scalar_lea.vmem %s2043_s0, %s1232_s11  ;;  %v1428_v18 = vld [vmem:[#allocation5 + $0x78] ss:$12 sps:$4 sm:$0xff]   ;;  %s330_s17 = scalar_lea.vmem %s2044_s1, %s1234_s18 }
  0x3f   : > { %537 = vmatpush1.bf16.msra.mxu0 %v1412_v6  ;;  %v1425_v16 = vld [vmem:[#allocation5 + $0x7c] ss:$12 sps:$4 sm:$0xff]   ;;  %v1427_v17 = vld [vmem:[#allocation5 + $0x80] ss:$12 sps:$4 sm:$0xff]   ;;  %v1431_v21 = vld [vmem:[#allocation5 + $0x98] ss:$12 sps:$4 sm:$0xff]  }
  0x40   : > { %1301 = vmatpush3.bf16.msra.mxu1 %v1411_v5  ;;  %538 = vmatprep.subr.bf16.mxu0 %v1413_v7  ;;  %v1437_v19 = vld [vmem:[%s1828_s19] sm:$0xff]   ;;  %v1433_v23 = vld [vmem:[#allocation5 + $0xac] ss:$12 sps:$4 sm:$0xff]   ;;  %v1436_v25 = vld [vmem:[#allocation5 + $0xa8] ss:$12 sps:$4 sm:$0xff]   ;;  %s300_s14 = sand.u32 1, %s1661_s22  }
  0x41   : > { %1302 = vmatprep.subr.bf16.mxu1 %v1415_v8  ;;  %v1429_v20 = vld [vmem:[#allocation5 + $0x94] ss:$12 sps:$4 sm:$0xff]   ;;  %1314 = vmatprep.mubr.bf16.mxu1 %v1437_v19  ;;  %v1432_v22 = vld [vmem:[#allocation5 + $0x90] ss:$12 sps:$4 sm:$0xff]   ;;  %v1438_v26 = vld [vmem:[%s1828_s19 + $0x8] sm:$0xff]   ;;  %s1024_s15 = sand.u32 1, %s1754_s27  }
  0x42   : > { %v1435_v24 = vld [vmem:[#allocation5 + $0xb0] ss:$12 sps:$4 sm:$0xff]   ;;  %s1914_s16 = sshll.u32 %s1669_s24, 7  ;;  %s1925_s24 = scalar_lea.sflag [#allocation10], %s1024_s15 }
  0x43   : > { %539 = vmatpush1.bf16.msra.mxu0 %v1416_v9  ;;  %v1439_v27 = vld [vmem:[%s1828_s19 + $0x10] sm:$0xff]   ;;  %v1440_v28 = vld [vmem:[%s1828_s19 + $0x18] sm:$0xff]   ;;  %v1265_v29 = vld [vmem:[%s2046_s3 + $0x2] ss:$0 sm:$0xff]  ;;  %s1904_s19 = sshll.u32 %s300_s14, 3  ;;  %s1922_s13 = scalar_lea.hbm %s2048_s5, %s1914_s16 }
  0x44   : > { %1303 = vmatpush3.bf16.msra.mxu1 %v1415_v8  ;;  %540 = vmatprep.subr.bf16.mxu0 %v1417_v10  ;;  %v1847_v42 = vld [vmem:[%s2046_s3 + $0x1] ss:$0 sm:$0xff]  ;;  %s309_s8 = scalar_lea.vmem [#allocation9], %s1904_s19  ;;  %p2060_p10 = scmp.ne.s32.totalorder %s2053_s7, 0 }
  0x45   : > { %1304 = vmatprep.subr.bf16.mxu1 %v1419_v11  ;;  %s1056_s12 = sshll.u32 %s309_s8, 4  ;;  %s1916_s12 = int_to_ptr.vmem [resolvable:$true] %s1056_s12 }
  0x46   : > { %s1535_s27 = scalar_lea.vmem %s1916_s12, 128 }
  0x47   : > { %541 = vmatpush1.bf16.msra.mxu0 %v1420_v12  ;;  %p1536_p8 = scmp.ne.s32.totalorder %s1916_s12, %s1535_s27 }
  0x48   : > { %1305 = vmatpush3.bf16.msra.mxu1 %v1419_v11  ;;  %542 = vmatprep.subr.bf16.mxu0 %v1421_v13 }
  0x49   : > { %1306 = vmatprep.subr.bf16.mxu1 %v1423_v14  ;;  %p1537_p11 = pnand %p1536_p8, %p2060_p10 }
  0x4b   : > { %543 = vmatpush1.bf16.msra.mxu0 %v1424_v15  ;;  %p1538_p13 = pneg %p1537_p11 }
  0x4c   : > { %1307 = vmatpush3.bf16.msra.mxu1 %v1423_v14  ;;  %544 = vmatprep.subr.bf16.mxu0 %v1425_v16 }
  0x4d   : > { %1308 = vmatprep.subr.bf16.mxu1 %v1427_v17 }
  0x4f   : > { %545 = vmatpush1.bf16.msra.mxu0 %v1428_v18 }
  0x50   : > { %1309 = vmatpush3.bf16.msra.mxu1 %v1427_v17  ;;  %546 = vmatprep.subr.bf16.mxu0 %v1429_v20 }
  0x51   : > { %1310 = vmatprep.subr.bf16.mxu1 %v1431_v21 }
  0x53   : > { %547 = vmatpush1.bf16.msra.mxu0 %v1432_v22 }
  0x54   : > { %1311 = vmatpush3.bf16.msra.mxu1 %v1431_v21  ;;  %548 = vmatprep.subr.bf16.mxu0 %v1433_v23 }
  0x55   : > { %1312 = vmatprep.subr.bf16.mxu1 %v1435_v24 }
  0x57   : > { %549 = vmatpush1.bf16.msra.mxu0 %v1436_v25 }
  0x58   : > { %1313 = vmatpush3.bf16.msra.mxu1 %v1435_v24 }
  0x5a   : > { %567 = vmatmul.mubr.bf16.vlgmr.msra.gmra.mrb[0].mxu0 %v1437_v19 }
  0x5b   : > { %1315 = vmatmul.mubr.bf16.vlgmr.msra.gmra.mrb[0].mxu1 %v1438_v26  ;;  %576 = vmatprep.mubr.bf16.mxu0 %v1682_v0 }
  0x5c   : > { %1318 = vmatprep.mubr.bf16.mxu1 %v1439_v27 }
  0x62   : > { %577 = vmatmul.mubr.bf16.gmra.mrb[4].mxu0 %v1438_v26 }
  0x63   : > { %1319 = vmatmul.mubr.bf16.gmra.mrb[4].mxu1 %v1440_v28  ;;  %586 = vmatprep.mubr.bf16.mxu0 %v1682_v0 }
  0x6a   : > { %587 = vmatmul.mubr.bf16.gmra.mrb[8].mxu0 %v1439_v27 }
  0x6b   : > { %596 = vmatprep.mubr.bf16.mxu0 %v1682_v0 }
  0x72   : > { %597 = vmatmul.mubr.bf16.gmra.mrb[12].mxu0 %v1440_v28 }
 0x12d   : > { %v1840_v30 = vpop.f32.mrb[0].mxu0 }
 0x12e   : > { %v1316_v31 = vpop.f32.mrb[0].mxu1  ;;  %v570_v33 = vpop.f32.mrb[1].mxu0 }
 0x12f   : > { %v719_v32 = vadd.f32 %v1316_v31, %v1265_v29  ;;  %v641_v34 = vpop.f32.mrb[1].mxu1  ;;  %v1842_v36 = vpop.f32.mrb[2].mxu0  ;;  %v694_v47 = vadd.f32 %v1847_v42, %v570_v33 }
 0x130   : > { %v717_v35 = vadd.f32 %v1265_v29, %v641_v34  ;;  %v1317_v37 = vpop.f32.mrb[2].mxu1  ;;  %v574_v40 = vpop.f32.mrb[3].mxu0 }
 0x131   : > { %v1268_v38 = vmul.f32 -1.442695, %v719_v32  ;;  %v720_v39 = vadd.f32 %v1317_v37, %v1265_v29  ;;  %v644_v41 = vpop.f32.mrb[3].mxu1  ;;  %v695_v8 = vadd.f32 %v1847_v42, %v574_v40  ;;  %v1274_v37 = vld [vmem:[%s2046_s3 + $0x3] ss:$0 sm:$0xff] }
 0x132   : > { %v1266_v43 = vmul.f32 -1.442695, %v717_v35  ;;  %v718_v44 = vadd.f32 %v1265_v29, %v644_v41 }
 0x133   : > { %1441 = vpow2.f32 %v1268_v38  ;;  %v1269_v45 = vmul.f32 -1.442695, %v720_v39 }
 0x134   : > { %1443 = vpow2.f32 %v1266_v43  ;;  %v1267_v46 = vmul.f32 -1.442695, %v718_v44 }
 0x135   : > { %1445 = vpow2.f32 %v1269_v45  ;;  %v1850_v48 = vpop.f32.mrb[4].mxu0 }
 0x136   : > { %v1320_v49 = vpop.f32.mrb[4].mxu1  ;;  %1447 = vpow2.f32 %v1267_v46  ;;  %v580_v51 = vpop.f32.mrb[5].mxu0 }
 0x137   : > { %v723_v50 = vadd.f32 %v1320_v49, %v1265_v29  ;;  %v657_v52 = vpop.f32.mrb[5].mxu1  ;;  %v696_v53 = vadd.f32 %v1847_v42, %v580_v51  ;;  %v1853_v55 = vpop.f32.mrb[6].mxu0  ;;  %1449 = vtanh.f32 %v694_v47 }
 0x138   : > { %v721_v54 = vadd.f32 %v1265_v29, %v657_v52  ;;  %v1321_v56 = vpop.f32.mrb[6].mxu1  ;;  %v584_v59 = vpop.f32.mrb[7].mxu0 }
 0x139   : > { %v1272_v57 = vmul.f32 -1.442695, %v723_v50  ;;  %v724_v58 = vadd.f32 %v1321_v56, %v1265_v29  ;;  %v660_v60 = vpop.f32.mrb[7].mxu1  ;;  %1451 = vtanh.f32 %v696_v53  ;;  %v697_v62 = vadd.f32 %v1847_v42, %v584_v59 }
 0x13a   : > { %v1270_v61 = vmul.f32 -1.442695, %v721_v54  ;;  %v722_v63 = vadd.f32 %v1265_v29, %v660_v60 }
 0x13b   : > { %1453 = vpow2.f32 %v1272_v57  ;;  %v1273_v0 = vmul.f32 -1.442695, %v724_v58 }
 0x13c   : > { %1455 = vpow2.f32 %v1270_v61  ;;  %v1271_v1 = vmul.f32 -1.442695, %v722_v63 }
 0x13d   : > { %v1442_v2 = vpop.eup %1441  ;;  %1457 = vpow2.f32 %v1273_v0  ;;  %v1856_v5 = vpop.f32.mrb[8].mxu0 }
 0x13e   : > { %v1444_v3 = vpop.eup %1443  ;;  %v751_v4 = vadd.f32 1.0, %v1442_v2  ;;  %1459 = vtanh.f32 %v697_v62  ;;  %v590_v9 = vpop.f32.mrb[9].mxu0 }
 0x13f   : > { %v1446_v6 = vpop.eup %1445  ;;  %v749_v7 = vadd.f32 1.0, %v1444_v3  ;;  %1461 = vpow2.f32 %v1271_v1  ;;  %v1859_v11 = vpop.f32.mrb[10].mxu0  ;;  %v698_v15 = vadd.f32 %v1847_v42, %v590_v9 }
 0x140   : > { %1463 = vrcp.f32 %v751_v4  ;;  %v752_v10 = vadd.f32 1.0, %v1446_v6  ;;  %v1448_v12 = vpop.eup %1447  ;;  %v594_v13 = vpop.f32.mrb[11].mxu0  ;;  %v1683_v4 = vmov -1e+30   ;;  %v1684_v6 = vmov 0.0  }
 0x141   : > { %1465 = vrcp.f32 %v749_v7  ;;  %v750_v14 = vadd.f32 1.0, %v1448_v12  ;;  %v1450_v16 = vpop.eup %1449  ;;  %v699_v17 = vadd.f32 %v1847_v42, %v594_v13  ;;  %339 = vst.msk [vmem:[#allocation2] sm:$0x1] %vm338_vm0, %v1683_v4  ;;  %340 = vst.msk [vmem:[#allocation3] sm:$0x1] %vm338_vm0, %v1684_v6  ;;  %v813_v13 = vld [vmem:[%s330_s17 + $0x8] sm:$0xff] }
 0x142   : > { %1467 = vrcp.f32 %v752_v10  ;;  %341 = vst [vmem:[#allocation4] sm:$0x1] %v1684_v6 }
 0x143   : > { %1469 = vtanh.f32 %v695_v8  ;;  %v1452_v18 = vpop.eup %1451 }
 0x144   : > { %1471 = vrcp.f32 %v750_v14  ;;  %v816_v14 = vld [vmem:[%s330_s17 + $0x20] sm:$0xff] }
 0x145   : > { %v1454_v19 = vpop.eup %1453  ;;  %1473 = vtanh.f32 %v698_v15  ;;  %v1863_v22 = vpop.f32.mrb[12].mxu0  ;;  %v817_v15 = vld [vmem:[%s330_s17 + $0x28] sm:$0xff] }
 0x146   : > { %v1456_v20 = vpop.eup %1455  ;;  %v755_v21 = vadd.f32 1.0, %v1454_v19  ;;  %1475 = vtanh.f32 %v699_v17  ;;  %v600_v25 = vpop.f32.mrb[13].mxu0  ;;  %v814_v17 = vld [vmem:[%s330_s17 + $0x10] sm:$0xff]  ;;  %v815_v19 = vld [vmem:[%s330_s17 + $0x18] sm:$0xff] }
 0x147   : > { %v1458_v23 = vpop.eup %1457  ;;  %v753_v24 = vadd.f32 1.0, %v1456_v20  ;;  %v700_v28 = vadd.f32 %v1847_v42, %v600_v25  ;;  %v1866_v29 = vpop.f32.mrb[14].mxu0 }
 0x148   : > { %v1460_v26 = vpop.eup %1459  ;;  %1477 = vrcp.f32 %v755_v21  ;;  %v756_v27 = vadd.f32 1.0, %v1458_v23  ;;  %v604_v32 = vpop.f32.mrb[15].mxu0 }
 0x149   : > { %v1462_v31 = vpop.eup %1461  ;;  %1479 = vrcp.f32 %v753_v24  ;;  %v701_v35 = vadd.f32 %v1847_v42, %v604_v32 }
 0x14a   : > { %v1464_v33 = vpop.eup %1463  ;;  %1481 = vrcp.f32 %v756_v27  ;;  %v754_v34 = vadd.f32 1.0, %v1462_v31  ;;  %v819_v27 = vld [vmem:[%s330_s17 + $0x38] sm:$0xff] }
 0x14b   : > { %v1466_v38 = vpop.eup %1465  ;;  %1483 = vtanh.f32 %v700_v28  ;;  %v775_v39 = vmul.f32 %v1464_v33, %v1452_v18  ;;  %v812_v18 = vld [vmem:[%s330_s17] sm:$0xff] }
 0x14c   : > { %v1468_v40 = vpop.eup %1467  ;;  %1485 = vrcp.f32 %v754_v34  ;;  %v773_v41 = vmul.f32 %v1466_v38, %v1450_v16  ;;  %v818_v16 = vld [vmem:[%s330_s17 + $0x30] sm:$0xff]  ;;  %s1685_s17 = smov [#allocation9]  }
 0x14d   : > { %v1470_v43 = vpop.eup %1469  ;;  %1487 = vtanh.f32 %v701_v35  ;;  %v790_v44 = vmul.f32 %v1274_v37, %v775_v39  ;;  %v776_v45 = vmul.f32 %v1468_v40, %v1460_v26  ;;  %s1539_s20 = sshll.u32 %s1685_s17, 4  ;;  %s1540_s20 = int_to_ptr.vmem [resolvable:$false] %s1539_s20 }
 0x14e   : > { %v1472_v46 = vpop.eup %1471  ;;  %v788_v47 = vmul.f32 %v1274_v37, %v773_v41  ;;  %s1541_s30 = scalar_lea.vmem %s1540_s20, 256  ;;  %p1542_p3 = scmp.lt.s32.totalorder %s1916_s12, %s1540_s20 }
 0x14f   : > { %800 = vadd.xlane.f32.xlu1 %v790_v44  ;;  %v774_v49 = vmul.f32 %v1472_v46, %v1470_v43  ;;  %v1474_v50 = vpop.eup %1473  ;;  %v791_v51 = vmul.f32 %v1274_v37, %v776_v45  ;;  %p1543_p5 = scmp.lt.s32.totalorder %s1541_s30, %s1535_s27 }
 0x150   : > { %796 = vadd.xlane.f32.xlu0 %v788_v47  ;;  %v1476_v42 = vpop.eup %1475 }
 0x151   : > { %v789_v53 = vmul.f32 %v1274_v37, %v774_v49  ;;  %p1544_p6 = por %p1543_p5, %p1542_p3 }
 0x152   : > { %v1478_v52 = vpop.eup %1477 }
 0x153   : > { %v1480_v54 = vpop.eup %1479  ;;  %802 = vadd.xlane.f32.xlu1 %v791_v51  ;;  %p1545_p7 = pnand %p1544_p6, %p1538_p13 }
 0x154   : > { %v1482_v56 = vpop.eup %1481  ;;  %798 = vadd.xlane.f32.xlu0 %v789_v53  ;;  %v777_v57 = vmul.f32 %v1480_v54, %v1474_v50  ;;  %v856_v53 = vlaneseq }
 0x155   : > { %v1484_v58 = vpop.eup %1483 }
 0x156   : > { %v1486_v59 = vpop.eup %1485  ;;  %v792_v60 = vmul.f32 %v1274_v37, %v777_v57  ;;  %v779_v61 = vmul.f32 %v1484_v58, %v1478_v52  ;;  %v1886_v57 = vshrl.u32 %v856_v53, 7 }
 0x157   : > { %v1488_v62 = vpop.eup %1487  ;;  %v778_v63 = vmul.f32 %v1486_v59, %v1476_v42 }
 0x158   : > { %804 = vadd.xlane.f32.xlu0 %v792_v60  ;;  %v780_v0 = vmul.f32 %v1488_v62, %v1482_v56  ;;  %v794_v2 = vmul.f32 %v1274_v37, %v779_v61  ;;  %v828_v60 = vld [vmem:[#allocation2] sm:$0x1]  ;;  %v858_v61 = vsub.s32 0, %v1886_v57 }
 0x159   : > { %v793_v1 = vmul.f32 %v1274_v37, %v778_v63 }
 0x15a   : > { %v795_v3 = vmul.f32 %v1274_v37, %v780_v0 }
 0x15b   : > { %806 = vadd.xlane.f32.xlu1 %v793_v1 }
 0x15c   : > { %808 = vadd.xlane.f32.xlu0 %v794_v2 }
 0x15f   : > { %810 = vadd.xlane.f32.xlu1 %v795_v3 }
 0x1dc   : > { %v801_v8 = vpop.xlane.xlu1 %800 }
 0x1dd   : > { %v797_v7 = vpop.xlane.xlu0 %796  ;;  %v822_v28 = vadd.f32 %v814_v17, %v801_v8 }
 0x1de   : > { %v820_v31 = vadd.f32 %v812_v18, %v797_v7 }
 0x1df   : > { %v832_v41 = vsel %vm829_vm1, %v822_v28, -inf }
 0x1e0   : > { %v803_v10 = vpop.xlane.xlu1 %802  ;;  %v830_v43 = vsel %vm829_vm1, %v820_v31, -inf }
 0x1e1   : > { %v799_v9 = vpop.xlane.xlu0 %798  ;;  %v823_v32 = vadd.f32 %v815_v19, %v803_v10 }
 0x1e2   : > { %v821_v21 = vadd.f32 %v813_v13, %v799_v9 }
 0x1e3   : > { %v833_v44 = vsel %vm829_vm1, %v823_v32, -inf }
 0x1e4   : > { %v831_v35 = vsel %vm829_vm1, %v821_v21, -inf }
 0x1e5   : > { %v805_v12 = vpop.xlane.xlu0 %804 }
 0x1e6   : > { %v824_v23 = vadd.f32 %v816_v14, %v805_v12 }
 0x1e8   : > { %v807_v20 = vpop.xlane.xlu1 %806  ;;  %v834_v37 = vsel %vm829_vm1, %v824_v23, -inf }
 0x1e9   : > { %v825_v24 = vadd.f32 %v817_v15, %v807_v20  ;;  %v809_v25 = vpop.xlane.xlu0 %808  ;;  %v835_v46 = vmax.f32 %v830_v43, %v834_v37 }
 0x1ea   : > { %v826_v26 = vadd.f32 %v818_v16, %v809_v25 }
 0x1eb   : > { %v836_v33 = vsel %vm829_vm1, %v825_v24, -inf }
 0x1ec   : > { %v811_v34 = vpop.xlane.xlu1 %810  ;;  %v838_v38 = vsel %vm829_vm1, %v826_v26, -inf  ;;  %v837_v40 = vmax.f32 %v831_v35, %v836_v33 }
 0x1ed   : > { %v827_v39 = vadd.f32 %v819_v27, %v811_v34  ;;  %v839_v47 = vmax.f32 %v832_v41, %v838_v38 }
 0x1ee   : > { %v842_v50 = vmax.f32 %v835_v46, %v837_v40 }
 0x1ef   : > { %v840_v45 = vsel %vm829_vm1, %v827_v39, -inf }
 0x1f0   : > { %v841_v49 = vmax.f32 %v833_v44, %v840_v45 }
 0x1f2   : > { %v843_v42 = vmax.f32 %v839_v47, %v841_v49 }
 0x1f4   : > { %v844_v51 = vmax.f32 %v842_v50, %v843_v42 }
 0x1f6   : > { %v845_v52 = vrot.slane %v844_v51, 4 }
 0x1f8   : > { %v846_v54 = vmax.f32 %v844_v51, %v845_v52 }
 0x1fa   : > { %v847_v56 = vrot.slane %v846_v54, 2 }
 0x1fc   : > { %v848_v58 = vmax.f32 %v846_v54, %v847_v56  ;;  %v885_v56 = vld [vmem:[#allocation3] sm:$0x1] }
 0x1fe   : > { %v849_v59 = vrot.slane %v848_v58, 1 }
 0x200   : > { %v850_v62 = vmax.f32 %v848_v58, %v849_v59 }
 0x202   : > { %v851_v63 = vmax.f32 %v828_v60, %v850_v62 }
 0x204   : > { %v859_v0 = vrot.slane %v851_v63, %v858_v61  ;;  %985 = vst.msk [vmem:[#allocation2] sm:$0x1] %vm338_vm0, %v851_v63  ;;  %v852_v33 = vsub.f32 %v828_v60, %v851_v63 }
 0x206   : > { %v861_v1 = vsub.f32 %v820_v31, %v859_v0  ;;  %v862_v2 = vsub.f32 %v821_v21, %v859_v0  ;;  %v863_v3 = vsub.f32 %v822_v28, %v859_v0  ;;  %v864_v4 = vsub.f32 %v823_v32, %v859_v0 }
 0x207   : > { %v865_v6 = vsub.f32 %v824_v23, %v859_v0  ;;  %v866_v9 = vsub.f32 %v825_v24, %v859_v0  ;;  %v867_v13 = vsub.f32 %v826_v26, %v859_v0  ;;  %v868_v15 = vsub.f32 %v827_v39, %v859_v0  ;;  %v1263_v0 = vld [vmem:[%s2046_s3] ss:$0 sm:$0xff] }
 0x208   : > { %v869_v7 = vmul.f32 1.442695, %v861_v1  ;;  %v871_v8 = vmul.f32 1.442695, %v862_v2  ;;  %v873_v10 = vmul.f32 1.442695, %v863_v3  ;;  %v679_v1 = vadd.f32 %v1263_v0, %v1840_v30 }
 0x209   : > { %v875_v12 = vmul.f32 1.442695, %v864_v4  ;;  %v877_v14 = vmul.f32 1.442695, %v865_v6  ;;  %v879_v16 = vmul.f32 1.442695, %v866_v9  ;;  %v680_v2 = vadd.f32 %v1263_v0, %v1842_v36 }
 0x20a   : > { %1489 = vpow2.f32 %v869_v7  ;;  %v881_v17 = vmul.f32 1.442695, %v867_v13  ;;  %v883_v18 = vmul.f32 1.442695, %v868_v15  ;;  %v853_v41 = vmul.f32 1.442695, %v852_v33 }
 0x20b   : > { %1491 = vpow2.f32 %v871_v8  ;;  %v1276_v28 = vld [vmem:[#allocation2] ss:$0 sm:$0xff]  ;;  %v681_v30 = vadd.f32 %v1263_v0, %v1850_v48 }
 0x20c   : > { %1493 = vpow2.f32 %v873_v10 }
 0x20d   : > { %1495 = vpow2.f32 %v875_v12 }
 0x20e   : > { %1497 = vpow2.f32 %v877_v14 }
 0x20f   : > { %1499 = vpow2.f32 %v879_v16 }
 0x210   : > { %1501 = vpow2.f32 %v881_v17 }
 0x211   : > { %1503 = vpow2.f32 %v883_v18 }
 0x212   : > { %1505 = vpow2.f32 %v853_v41 }
 0x214   : > { %v1490_v19 = vpop.eup %1489 }
 0x215   : > { %v1492_v20 = vpop.eup %1491  ;;  %v887_v21 = vsel %vm829_vm1, %v1490_v19, 0.0  ;;  %924 = vperm.xlu0 %1403, %v1490_v19  }
 0x216   : > { %v1494_v23 = vpop.eup %1493  ;;  %v888_v24 = vsel %vm829_vm1, %v1492_v20, 0.0  ;;  %929 = vperm.xlu1 %1404, %v1492_v20  }
 0x217   : > { %v1496_v25 = vpop.eup %1495  ;;  %v889_v26 = vadd.f32 %v888_v24, %v887_v21  ;;  %v890_v27 = vsel %vm829_vm1, %v1494_v23, 0.0 }
 0x218   : > { %v1498_v31 = vpop.eup %1497  ;;  %v892_v34 = vsel %vm829_vm1, %v1496_v25, 0.0 }
 0x219   : > { %v891_v32 = vadd.f32 %v890_v27, %v889_v26  ;;  %1004 = vperm.xlu0 %1403, %v1276_v28   ;;  %v1500_v35 = vpop.eup %1499  ;;  %v894_v38 = vsel %vm829_vm1, %v1498_v31, 0.0 }
 0x21a   : > { %934 = vperm.xlu1 %1404, %v1494_v23   ;;  %v1502_v39 = vpop.eup %1501  ;;  %v896_v43 = vsel %vm829_vm1, %v1500_v35, 0.0 }
 0x21b   : > { %v893_v37 = vadd.f32 %v892_v34, %v891_v32  ;;  %v1504_v44 = vpop.eup %1503  ;;  %v898_v46 = vsel %vm829_vm1, %v1502_v39, 0.0 }
 0x21c   : > { %v900_v49 = vsel %vm829_vm1, %v1504_v44, 0.0  ;;  %v1506_v54 = vpop.eup %1505 }
 0x21d   : > { %v895_v40 = vadd.f32 %v894_v38, %v893_v37  ;;  %v886_v59 = vmul.f32 %v1506_v54, %v885_v56 }
 0x21e   : > { %939 = vperm.xlu1 %1404, %v1496_v25  }
 0x21f   : > { %v897_v45 = vadd.f32 %v896_v43, %v895_v40 }
 0x221   : > { %v899_v47 = vadd.f32 %v898_v46, %v897_v45 }
 0x222   : > { %944 = vperm.xlu1 %1404, %v1498_v31  }
 0x223   : > { %v901_v50 = vadd.f32 %v900_v49, %v899_v47 }
 0x225   : > { %v902_v42 = vrot.slane %v901_v50, 4 }
 0x226   : > { %949 = vperm.xlu1 %1404, %v1500_v35  }
 0x227   : > { %v903_v51 = vadd.f32 %v902_v42, %v901_v50 }
 0x229   : > { %v904_v52 = vrot.slane %v903_v51, 2 }
 0x22a   : > { %954 = vperm.xlu1 %1404, %v1502_v39  }
 0x22b   : > { %v905_v53 = vadd.f32 %v904_v52, %v903_v51 }
 0x22d   : > { %v906_v58 = vrot.slane %v905_v53, 1 }
 0x22e   : > { %959 = vperm.xlu1 %1404, %v1504_v44  }
 0x22f   : > { %v907_v60 = vadd.f32 %v906_v58, %v905_v53 }
 0x231   : > { %v908_v62 = vadd.f32 %v907_v60, %v886_v59 }
 0x232   : > { %914 = vperm.xlu1 %1404, %v1506_v54  }
 0x233   : > { %910 = vst.msk [vmem:[#allocation3] sm:$0x1] %vm338_vm0, %v908_v62 }
 0x23a   : > { %v1277_v63 = vld [vmem:[#allocation3] ss:$0 sm:$0xff] }
 0x23b   : > { %1015 = vperm.xlu1 %1404, %v1277_v63  }
 0x294   : > { %v925_v3 = vpop.permute.xlu0 %924 }
 0x295   : > { %v930_v4 = vpop.permute.xlu1 %929  ;;  %v962_v6 = vmul.f32 %v925_v3, %v679_v1 }
 0x296   : > { %v963_v7 = vmul.f32 %v930_v4, %v680_v2 }
 0x298   : > { %v970_v36 = vadd.f32 %v963_v7, %v962_v6  ;;  %v1005_v8 = vpop.permute.xlu0 %1004 }
 0x299   : > { %v935_v9 = vpop.permute.xlu1 %934  ;;  %1007 = vst [vmem:[%s309_s8] sm:$0xff] %v1005_v8 }
 0x29a   : > { %v964_v10 = vmul.f32 %v935_v9, %v681_v30 }
 0x29b   : > { %1548 = shalt.err (!%p1545_p7)
}
 0x29c   : > { %s1549_s8 = scalar_lea.hbm %s1922_s13, 128  ;;  %s1553_s11 = scalar_lea.hbm %s2048_s5, 256 }
 0x29d   : > { %p1550_p9 = scmp.ne.s32.totalorder %s1922_s13, %s1549_s8  ;;  %p1554_p2 = scmp.lt.u32.totalorder %s1922_s13, %s2048_s5 }
 0x29e   : > { %p1555_p1 = scmp.lt.u32.totalorder %s1553_s11, %s1549_s8  ;;  %p1557_p8 = scmp.lt.u32.totalorder %s1549_s8, %s1922_s13 }
 0x29f   : > { %p1551_p12 = pnand %p1550_p9, %p2060_p10 }
 0x2a0   : > { %p1556_p4 = por %p1555_p1, %p1554_p2 }
 0x2a1   : > { %p1552_p0 = pneg %p1551_p12 }
 0x2a2   : > { %p1558_p11 = por %p1557_p8, %p1556_p4 }
 0x2a4   : > { %p1559_p13 = pnand %p1558_p11, %p1552_p0 }
 0x2a6   : > { %1562 = shalt.err (!%p1559_p13)
}
 0x2a7   : > { %1327 = dma.vmem_to_hbm [thread:$0]  (%p2060_p10), %s1916_s12, 128, %s1922_s13, %s1925_s24   ;;  %v682_v48 = vadd.f32 %v1263_v0, %v1853_v55  ;;  %v971_v12 = vadd.f32 %v970_v36, %v964_v10  ;;  %v940_v13 = vpop.permute.xlu1 %939  ;;  %v683_v15 = vadd.f32 %v1263_v0, %v1856_v5  ;;  %v684_v19 = vadd.f32 %v1263_v0, %v1859_v11  ;;  %v911_v38 = vld [vmem:[#allocation4] sm:$0x1] }
 0x2a8   : > { %v685_v24 = vadd.f32 %v1263_v0, %v1863_v22  ;;  %v686_v55 = vadd.f32 %v1263_v0, %v1866_v29  ;;  %s316_s12 = scalar_lea.vmem [#allocation11], %s1904_s19  ;;  %s1963_s8 = scalar_lea.hbm %s2049_s6, %s1914_s16 }
 0x2a9   : > { %v965_v14 = vmul.f32 %v940_v13, %v682_v48  ;;  %s1069_s13 = sshll.u32 %s316_s12, 4  ;;  %s1686_s18 = smov [#allocation11]   ;;  %s1957_s13 = int_to_ptr.vmem [resolvable:$true] %s1069_s13 }
 0x2aa   : > { %s1563_s15 = scalar_lea.vmem %s1957_s13, 128  ;;  %s1567_s11 = sshll.u32 %s1686_s18, 4  ;;  %s1568_s11 = int_to_ptr.vmem [resolvable:$false] %s1567_s11 }
 0x2ab   : > { %v972_v16 = vadd.f32 %v971_v12, %v965_v14  ;;  %v945_v17 = vpop.permute.xlu1 %944  ;;  %p1564_p3 = scmp.ne.s32.totalorder %s1957_s13, %s1563_s15  ;;  %s1569_s17 = scalar_lea.vmem %s1568_s11, 256 }
 0x2ac   : > { %v966_v18 = vmul.f32 %v945_v17, %v683_v15  ;;  %p1570_p7 = scmp.lt.s32.totalorder %s1957_s13, %s1568_s11  ;;  %p1571_p9 = scmp.lt.s32.totalorder %s1569_s17, %s1563_s15 }
 0x2ad   : > { %p1565_p5 = pnand %p1564_p3, %p2060_p10 }
 0x2ae   : > { %v973_v20 = vadd.f32 %v972_v16, %v966_v18  ;;  %p1572_p12 = por %p1571_p9, %p1570_p7 }
 0x2af   : > { %v950_v21 = vpop.permute.xlu1 %949  ;;  %p1566_p6 = pneg %p1565_p5 }
 0x2b0   : > { %v967_v23 = vmul.f32 %v950_v21, %v684_v19 }
 0x2b1   : > { %p1573_p0 = pnand %p1572_p12, %p1566_p6 }
 0x2b2   : > { %v974_v25 = vadd.f32 %v973_v20, %v967_v23 }
 0x2b3   : > { %v955_v26 = vpop.permute.xlu1 %954 }
 0x2b4   : > { %v968_v27 = vmul.f32 %v955_v26, %v685_v24 }
 0x2b6   : > { %v975_v28 = vadd.f32 %v974_v25, %v968_v27 }
 0x2b7   : > { %v960_v31 = vpop.permute.xlu1 %959 }
 0x2b8   : > { %v969_v5 = vmul.f32 %v960_v31, %v686_v55 }
 0x2ba   : > { %v976_v32 = vadd.f32 %v975_v28, %v969_v5 }
 0x2bb   : > { %v915_v35 = vpop.permute.xlu1 %914 }
 0x2bc   : > { %v977_v33 = vrot.slane %v976_v32, 4  ;;  %v920_v22 = vrot.slane %v915_v35, %v858_v61 }
 0x2be   : > { %v978_v34 = vadd.f32 %v977_v33, %v976_v32  ;;  %v921_v41 = vmul.f32 %v920_v22, %v911_v38 }
 0x2bf   : > { %v1016_v39 = vpop.permute.xlu1 %1015 }
 0x2c0   : > { %v979_v11 = vrot.slane %v978_v34, 2  ;;  %1018 = vst [vmem:[%s316_s12] sm:$0xff] %v1016_v39 }
 0x2c2   : > { %v980_v37 = vadd.f32 %v979_v11, %v978_v34 }
 0x2c4   : > { %v981_v29 = vrot.slane %v980_v37, 1 }
 0x2c6   : > { %v982_v40 = vadd.f32 %v981_v29, %v980_v37 }
 0x2c7   : > { %1576 = shalt.err (!%p1573_p0)
}
 0x2c8   : > { %s1577_s20 = scalar_lea.hbm %s1963_s8, 128  ;;  %s1581_s30 = scalar_lea.hbm %s2049_s6, 256 }
 0x2c9   : > { %p1578_p2 = scmp.ne.s32.totalorder %s1963_s8, %s1577_s20  ;;  %p1582_p8 = scmp.lt.u32.totalorder %s1963_s8, %s2049_s6 }
 0x2ca   : > { %p1583_p11 = scmp.lt.u32.totalorder %s1581_s30, %s1577_s20  ;;  %p1585_p3 = scmp.lt.u32.totalorder %s1577_s20, %s1963_s8 }
 0x2cb   : > { %p1579_p1 = pnand %p1578_p2, %p2060_p10 }
 0x2cc   : > { %p1584_p13 = por %p1583_p11, %p1582_p8 }
 0x2cd   : > { %p1580_p4 = pneg %p1579_p1 }
 0x2ce   : > { %p1586_p5 = por %p1585_p3, %p1584_p13 }
 0x2d0   : > { %p1587_p6 = pnand %p1586_p5, %p1580_p4 }
 0x2d2   : > { %1590 = shalt.err (!%p1587_p6)
}
 0x2d3   : > { %1328 = dma.vmem_to_hbm [thread:$0]  (%p2060_p10), %s1957_s13, 128, %s1963_s8, %s1925_s24   ;;  %v983_v57 = vadd.f32 %v982_v40, %v921_v41 }
 0x2d4   : > { %s302_s15 = scalar_lea.vmem [#allocation8], %s1904_s19  ;;  %s1992_s20 = scalar_lea.hbm %s2047_s4, %s1914_s16 }
 0x2d5   : > { %984 = vst [vmem:[#allocation4] sm:$0x1] %v983_v57  ;;  %s1043_s17 = sshll.u32 %s302_s15, 4  ;;  %s1020_s30 = scalar_lea.sflag [#allocation7], %s300_s14  ;;  %s1994_s17 = int_to_ptr.vmem [resolvable:$true] %s1043_s17 }
 0x2d6   : > { %s1591_s18 = scalar_lea.vmem %s1994_s17, 128  ;;  %s1687_s19 = smov [#allocation8]  }
 0x2d7   : > { %p1592_p7 = scmp.ne.s32.totalorder %s1994_s17, %s1591_s18  ;;  %s1595_s24 = sshll.u32 %s1687_s19, 4  ;;  %s1596_s24 = int_to_ptr.vmem [resolvable:$false] %s1595_s24 }
 0x2d8   : > { %s1597_s13 = scalar_lea.vmem %s1596_s24, 256  ;;  %p1598_p0 = scmp.lt.s32.totalorder %s1994_s17, %s1596_s24 }
 0x2d9   : > { %p1593_p9 = pnand %p1592_p7, %p2060_p10  ;;  %p1599_p2 = scmp.lt.s32.totalorder %s1597_s13, %s1591_s18 }
 0x2db   : > { %p1594_p12 = pneg %p1593_p9  ;;  %p1600_p1 = por %p1599_p2, %p1598_p0 }
 0x2dc   : > { %v1275_v61 = vld [vmem:[#allocation4] ss:$0 sm:$0xff] }
 0x2dd   : > { %996 = vst [vmem:[%s302_s15] sm:$0xff] %v1275_v61  ;;  %p1601_p4 = pnand %p1600_p1, %p1594_p12 }
 0x2df   : > { %1604 = shalt.err (!%p1601_p4)
}
 0x2e0   : > { %s1605_s14 = scalar_lea.hbm %s1992_s20, 128  ;;  %s1609_s11 = scalar_lea.hbm %s2047_s4, 256 }
 0x2e1   : > { %p1606_p8 = scmp.ne.s32.totalorder %s1992_s20, %s1605_s14  ;;  %p1610_p3 = scmp.lt.u32.totalorder %s1992_s20, %s2047_s4 }
 0x2e2   : > { %p1611_p5 = scmp.lt.u32.totalorder %s1609_s11, %s1605_s14  ;;  %p1613_p7 = scmp.lt.u32.totalorder %s1605_s14, %s1992_s20 }
 0x2e3   : > { %p1607_p11 = pnand %p1606_p8, %p2060_p10 }
 0x2e4   : > { %p1612_p6 = por %p1611_p5, %p1610_p3 }
 0x2e5   : > { %p1608_p13 = pneg %p1607_p11 }
 0x2e6   : > { %p1614_p9 = por %p1613_p7, %p1612_p6 }
 0x2e8   : > { %p1615_p12 = pnand %p1614_p9, %p1608_p13 }
 0x2ea   : > { %1618 = shalt.err (!%p1615_p12)
}
 0x2eb   : > { %1326 = dma.vmem_to_hbm [thread:$0]  (%p2060_p10), %s1994_s17, 128, %s1992_s20, %s1020_s30  }
 0x2ec PF: > { %p1348_p0 = scmp.ge.s32.totalorder %s1677_s26, 2  ;;  %s1081_s27 = sand.u32 1, %s1657_s21  }
 0x2ed   : > { %p2061_p2 = scmp.ne.s32.totalorder %s2054_s9, 0  ;;  %s1082_s18 = scalar_lea.sflag [#allocation7], %s1081_s27 }
 0x2ef   : > { %p1337_p1 = pnand %p1348_p0, %p2061_p2 }
 0x2f1   : > { %1648 = dma.done.wait (!%p1337_p1), %s1082_s18, 128  }
 0x2f2   : > { %1650 = vsyncadd (!%p1337_p1), %s1082_s18, 4294967168  ;;  %s1090_s19 = sand.u32 1, %s1222_s28  }
 0x2f3   : > { %s1091_s24 = scalar_lea.sflag [#allocation10], %s1090_s19 }
 0x2f4   : > { %1652 = dma.done.wait (!%p1337_p1), %s1091_s24, 256  }
 0x2f5   : > { %1654 = vsyncadd (!%p1337_p1), %s1091_s24, 4294967040  ;;  %s24_s26 = sadd.s32 1, %s1677_s26   ;;  %s2062_s21 = smov %s1661_s22 }
 0x2f6   : > { %p21_p10 = scmp.ge.s32.totalorder %s24_s26, 4   ;;  %s2063_s22 = smov %s1665_s23 }
 0x2f7   : > { %s2064_s23 = smov %s1781_s10  ;;  %s2065_s24 = smov %s1673_s25 }
 0x2f8   : > { %s2066_s25 = smov %s2068_s29  ;;  %23 = sbr.rel (!%p21_p10) target bundleno = 7 (0x7), region = 119 }
 0x2ff   :  { %1105 = vsyncpa [#allocation6], 1 }
 0x300   :  { %1107 = vsyncpa [#allocation6 + $0x1], 1 }
 0x301   :  { %1108 = vsyncpa [#allocation7], 1 }
 0x302   :  { %1110 = vsyncpa [#allocation7 + $0x1], 1 }
 0x303   :  { %1111 = vsyncpa [#allocation10], 1 }
 0x304   :  { %1113 = vsyncpa [#allocation10 + $0x1], 1 }

</bundles_post_ra>
